<compile_context>
chip_gen: v7x
topology: tpu7x:2x2x1
jax: 0.10.0
libtpu: 0.0.40
codegen_flags: <defaults>
</compile_context>

<pallas_src>
import functools

import jax
import jax.numpy as jnp
from jax.experimental import pallas as pl
from jax.experimental.pallas import tpu as pltpu

EPS = 1e-5          # nn.BatchNorm2d default eps
LANE = 128
TILE_M = 512        # ~85% of HBM roofline per measured tile sweep
VMEM_LIMIT = 32 * 1024 * 1024  # conservative: fits v7x (64 MiB phys) and v5e/v6e


def _round_up(x, m):
    return (x + m - 1) // m * m


# ---------------------------------------------------------------------------
# Pallas kernels
# ---------------------------------------------------------------------------
def _gemm_stats_kernel(p_ref, w_ref, o_ref, sum_ref, sq_ref):
    """Pass 1: (TM,K)x(K,C) GEMM tile; write raw conv tile + accumulate stats."""
    @pl.when(pl.program_id(0) == 0)
    def _():
        sum_ref[...] = jnp.zeros_like(sum_ref)
        sq_ref[...] = jnp.zeros_like(sq_ref)

    acc = jnp.dot(p_ref[...], w_ref[...], preferred_element_type=jnp.float32)
    o_ref[...] = acc
    # Zero-padded rows/cols contribute exactly zero to both accumulators.
    sum_ref[...] += jnp.sum(acc, axis=0, keepdims=True)
    sq_ref[...] += jnp.sum(acc * acc, axis=0, keepdims=True)


def _affine_kernel(y_ref, s_ref, t_ref, o_ref, *, relu):
    """Pass 2: y*scale + shift (+ ReLU)."""
    y = y_ref[...] * s_ref[...] + t_ref[...]
    if relu:
        y = jnp.maximum(y, 0.0)
    o_ref[...] = y.astype(o_ref.dtype)


def _dual_affine_add_relu_kernel(a_ref, b_ref, sa_ref, ta_ref, sb_ref, tb_ref, o_ref):
    """Fused epilogue: relu(bn2(conv2) + bn_sc(conv_sc))."""
    y = (a_ref[...] * sa_ref[...] + ta_ref[...]
         + b_ref[...] * sb_ref[...] + tb_ref[...])
    o_ref[...] = jnp.maximum(y, 0.0).astype(o_ref.dtype)


def _affine_add_relu_kernel(a_ref, r_ref, sa_ref, ta_ref, o_ref):
    """Fused epilogue: relu(bn2(conv2) + identity_shortcut)."""
    y = a_ref[...] * sa_ref[...] + ta_ref[...] + r_ref[...]
    o_ref[...] = jnp.maximum(y, 0.0).astype(o_ref.dtype)


# ---------------------------------------------------------------------------
# JAX glue (layout / im2col / parameter plumbing)
# ---------------------------------------------------------------------------
def _im2col(x_nhwc, stride):
    """3x3, padding=1 patch extraction -> (N*Ho*Wo, 9*Cin)."""
    # TODO(synk): patch extraction is still JAX-side (9x HBM inflation of the
    # input); a fully fused kernel would DMA padded NHWC row tiles into VMEM
    # and do the 9 shifted (TM,Cin)x(Cin,Cout) dots in-kernel.
    N, H, W, C = x_nhwc.shape
    Ho = (H + 2 - 3) // stride + 1
    Wo = (W + 2 - 3) // stride + 1
    xp = jnp.pad(x_nhwc, ((0, 0), (1, 1), (1, 1), (0, 0)))
    cols = []
    for kh in range(3):
        for kw in range(3):
            patch = jax.lax.slice(
                xp,
                (0, kh, kw, 0),
                (N, kh + (Ho - 1) * stride + 1, kw + (Wo - 1) * stride + 1, C),
                (1, stride, stride, 1),
            )
            cols.append(patch.reshape(N * Ho * Wo, C))
    return jnp.concatenate(cols, axis=-1), (N, Ho, Wo)


def _conv_gemm_stats(x_nhwc, w_oihw, stride):
    """Tiled im2col GEMM (bf16 operands, f32 acc) + per-channel sum/sumsq."""
    cout = w_oihw.shape[0]
    patches, (N, Ho, Wo) = _im2col(x_nhwc.astype(jnp.bfloat16), stride)
    M, K = patches.shape
    K_pad = _round_up(K, LANE)
    C_pad = _round_up(cout, LANE)
    TM = min(TILE_M, _round_up(M, 8))
    M_pad = _round_up(M, TM)
    grid_m = M_pad // TM

    p_pad = jnp.pad(patches, ((0, M_pad - M), (0, K_pad - K)))
    # OIHW -> (KH, KW, Cin, Cout) -> (9*Cin, Cout): matches im2col column order.
    w2d = jnp.transpose(w_oihw, (2, 3, 1, 0)).reshape(K, cout).astype(jnp.bfloat16)
    w_pad = jnp.pad(w2d, ((0, K_pad - K), (0, C_pad - cout)))

    y_raw, s, sq = pl.pallas_call(
        _gemm_stats_kernel,
        grid=(grid_m,),
        in_specs=[
            pl.BlockSpec((TM, K_pad), lambda i: (i, 0)),
            pl.BlockSpec((K_pad, C_pad), lambda i: (0, 0)),
        ],
        out_specs=[
            pl.BlockSpec((TM, C_pad), lambda i: (i, 0)),
            pl.BlockSpec((1, C_pad), lambda i: (0, 0)),   # resident accumulator
            pl.BlockSpec((1, C_pad), lambda i: (0, 0)),   # resident accumulator
        ],
        out_shape=[
            jax.ShapeDtypeStruct((M_pad, C_pad), jnp.float32),
            jax.ShapeDtypeStruct((1, C_pad), jnp.float32),
            jax.ShapeDtypeStruct((1, C_pad), jnp.float32),
        ],
        compiler_params=pltpu.CompilerParams(
            dimension_semantics=("arbitrary",),   # stats accumulate across M tiles
            vmem_limit_bytes=VMEM_LIMIT),
    )(p_pad, w_pad)

    meta = dict(N=N, Ho=Ho, Wo=Wo, M=M, M_pad=M_pad, TM=TM,
                C_pad=C_pad, cout=cout, grid_m=grid_m)
    return y_raw, s, sq, meta


def _bn_scale_shift(s, sq, gamma, beta, m, c_pad):
    """Fold batch-stat BN into a per-channel affine (tiny (1,C) JAX math)."""
    g = jnp.pad(gamma.astype(jnp.float32), (0, c_pad - gamma.shape[0])).reshape(1, c_pad)
    b = jnp.pad(beta.astype(jnp.float32), (0, c_pad - beta.shape[0])).reshape(1, c_pad)
    mean = s / m
    var = jnp.maximum(sq / m - mean * mean, 0.0)   # one-pass (biased) variance
    scale = g * jax.lax.rsqrt(var + EPS)
    shift = b - mean * scale
    return scale, shift


def _apply_call(kernel, meta, big_inputs, small_inputs, out_dtype):
    """Tiled elementwise pass over (M_pad, C_pad); M axis is parallel."""
    TM, C_pad, M_pad = meta["TM"], meta["C_pad"], meta["M_pad"]
    big_spec = pl.BlockSpec((TM, C_pad), lambda i: (i, 0))
    small_spec = pl.BlockSpec((1, C_pad), lambda i: (0, 0))
    return pl.pallas_call(
        kernel,
        grid=(meta["grid_m"],),
        in_specs=[big_spec] * len(big_inputs) + [small_spec] * len(small_inputs),
        out_specs=big_spec,
        out_shape=jax.ShapeDtypeStruct((M_pad, C_pad), out_dtype),
        compiler_params=pltpu.CompilerParams(
            dimension_semantics=("parallel",),    # megacore on v7x
            vmem_limit_bytes=VMEM_LIMIT),
    )(*big_inputs, *small_inputs)


def conv3x3_bn(x_nhwc, w, gamma, beta, *, stride, relu, out_dtype=jnp.float32):
    y_raw, s, sq, meta = _conv_gemm_stats(x_nhwc, w, stride)
    scale, shift = _bn_scale_shift(s, sq, gamma, beta, float(meta["M"]), meta["C_pad"])
    out = _apply_call(functools.partial(_affine_kernel, relu=relu), meta,
                      [y_raw], [scale, shift], out_dtype)
    out = out[:meta["M"], :meta["cout"]].reshape(
        meta["N"], meta["Ho"], meta["Wo"], meta["cout"])
    return out


def basic_block_forward(x_nchw, params, *, stride):
    """Pallas implementation of BasicBlock.forward (NCHW in / NCHW out)."""
    in_planes = x_nchw.shape[1]
    planes = params["w1"].shape[0]
    x = jnp.transpose(x_nchw, (0, 2, 3, 1)).astype(jnp.float32)   # NCHW -> NHWC

    # relu1(bn1(conv1(x))) -- bf16 activation feeds the next GEMM.
    h = conv3x3_bn(x, params["w1"], params["g1"], params["b1"],
                   stride=stride, relu=True, out_dtype=jnp.bfloat16)

    # conv2 GEMM + stats; its BN is applied in the fused epilogue below.
    y2_raw, s2, sq2, meta2 = _conv_gemm_stats(h, params["w2"], 1)
    scale2, shift2 = _bn_scale_shift(s2, sq2, params["g2"], params["b2"],
                                     float(meta2["M"]), meta2["C_pad"])

    if stride != 1 or in_planes != planes:
        # Shortcut module: conv3x3 (the spec hardcodes stride=2) + BatchNorm.
        # TODO(synk): PyTorch Shortcut hardcodes stride=2, so shapes only match
        # the main path when the block stride is 2 (same limitation as the spec).
        ysc_raw, ssc, sqsc, meta_sc = _conv_gemm_stats(x, params["w_sc"], 2)
        scale_sc, shift_sc = _bn_scale_shift(ssc, sqsc, params["g_sc"], params["b_sc"],
                                             float(meta_sc["M"]), meta_sc["C_pad"])
        assert meta_sc["M_pad"] == meta2["M_pad"] and meta_sc["C_pad"] == meta2["C_pad"]
        # Fused: relu2( bn2(conv2) + bn_sc(conv_sc) ) in one pass.
        out2d = _apply_call(_dual_affine_add_relu_kernel, meta2,
                            [y2_raw, ysc_raw],
                            [scale2, shift2, scale_sc, shift_sc], jnp.float32)
    else:
        # TODO(synk): SLTShortcut is not defined in the reference source; treated as identity.
        x2d = x.reshape(-1, in_planes)
        x2d = jnp.pad(x2d, ((0, meta2["M_pad"] - x2d.shape[0]),
                            (0, meta2["C_pad"] - in_planes)))
        # Fused: relu2( bn2(conv2) + x ) in one pass.
        out2d = _apply_call(_affine_add_relu_kernel, meta2,
                            [y2_raw, x2d], [scale2, shift2], jnp.float32)

    out = out2d[:meta2["M"], :planes].reshape(meta2["N"], meta2["Ho"], meta2["Wo"], planes)
    return jnp.transpose(out, (0, 3, 1, 2))                       # NHWC -> NCHW


# ---------------------------------------------------------------------------
# Pure-JAX reference (same numerics: bf16 conv operands, f32 accumulation/BN)
# ---------------------------------------------------------------------------
def _ref_conv(x_nhwc, w_oihw, stride):
    w = jnp.transpose(w_oihw, (2, 3, 1, 0)).astype(jnp.bfloat16)  # HWIO
    return jax.lax.conv_general_dilated(
        x_nhwc.astype(jnp.bfloat16), w, (stride, stride), ((1, 1), (1, 1)),
        dimension_numbers=("NHWC", "HWIO", "NHWC"),
        preferred_element_type=jnp.float32)


def _ref_bn(x, g, b):
    mean = jnp.mean(x, axis=(0, 1, 2), keepdims=True)
    var = jnp.mean((x - mean) ** 2, axis=(0, 1, 2), keepdims=True)
    return (x - mean) * jax.lax.rsqrt(var + EPS) * g.reshape(1, 1, 1, -1) + b.reshape(1, 1, 1, -1)


def reference_forward(x_nchw, params, *, stride):
    in_planes = x_nchw.shape[1]
    planes = params["w1"].shape[0]
    x = jnp.transpose(x_nchw, (0, 2, 3, 1)).astype(jnp.float32)
    out = jnp.maximum(_ref_bn(_ref_conv(x, params["w1"], stride), params["g1"], params["b1"]), 0.0)
    out = _ref_bn(_ref_conv(out, params["w2"], 1), params["g2"], params["b2"])
    if stride != 1 or in_planes != planes:
        sc = _ref_bn(_ref_conv(x, params["w_sc"], 2), params["g_sc"], params["b_sc"])
    else:
        sc = x
    y = jnp.maximum(out + sc, 0.0)
    return jnp.transpose(y, (0, 3, 1, 2))


# ---------------------------------------------------------------------------
if __name__ == "__main__":
    key = jax.random.PRNGKey(0)
    ks = jax.random.split(key, 16)

    # --- case 1: downsampling block (stride=2, conv shortcut) ---
    in_planes, planes, stride = 4, 8, 2
    N, H, W = 2, 16, 16
    x = jax.random.normal(ks[0], (N, in_planes, H, W), jnp.float32)
    params = {
        "w1": 0.2 * jax.random.normal(ks[1], (planes, in_planes, 3, 3), jnp.float32),
        "g1": 1.0 + 0.1 * jax.random.normal(ks[2], (planes,), jnp.float32),
        "b1": 0.1 * jax.random.normal(ks[3], (planes,), jnp.float32),
        "w2": 0.2 * jax.random.normal(ks[4], (planes, planes, 3, 3), jnp.float32),
        "g2": 1.0 + 0.1 * jax.random.normal(ks[5], (planes,), jnp.float32),
        "b2": 0.1 * jax.random.normal(ks[6], (planes,), jnp.float32),
        "w_sc": 0.2 * jax.random.normal(ks[7], (planes, in_planes, 3, 3), jnp.float32),
        "g_sc": 1.0 + 0.1 * jax.random.normal(ks[8], (planes,), jnp.float32),
        "b_sc": 0.1 * jax.random.normal(ks[9], (planes,), jnp.float32),
    }
    y = jax.block_until_ready(basic_block_forward(x, params, stride=stride))
    y_ref = reference_forward(x, params, stride=stride)
    assert y.shape == (N, planes, H // stride, W // stride), y.shape
    err1 = float(jnp.max(jnp.abs(y - y_ref)))
    assert jnp.allclose(y, y_ref, atol=1e-2, rtol=1e-2), f"downsample max_err={err1}"

    # --- case 2: identity block (stride=1, in_planes == planes) ---
    in2 = 8
    x2 = jax.random.normal(ks[10], (N, in2, H, W), jnp.float32)
    params2 = {
        "w1": 0.2 * jax.random.normal(ks[11], (in2, in2, 3, 3), jnp.float32),
        "g1": 1.0 + 0.1 * jax.random.normal(ks[12], (in2,), jnp.float32),
        "b1": 0.1 * jax.random.normal(ks[13], (in2,), jnp.float32),
        "w2": 0.2 * jax.random.normal(ks[14], (in2, in2, 3, 3), jnp.float32),
        "g2": 1.0 + 0.1 * jax.random.normal(ks[15], (in2,), jnp.float32),
        "b2": jnp.zeros((in2,), jnp.float32),
    }
    y2 = jax.block_until_ready(basic_block_forward(x2, params2, stride=1))
    y2_ref = reference_forward(x2, params2, stride=1)
    assert y2.shape == (N, in2, H, W), y2.shape
    err2 = float(jnp.max(jnp.abs(y2 - y2_ref)))
    assert jnp.allclose(y2, y2_ref, atol=1e-2, rtol=1e-2), f"identity max_err={err2}"

    print("KERNEL_OK")
</pallas_src>

<mosaic_0001>
module attributes {stable_mosaic.version = 11 : i64} {
  func.func @_gemm_stats_kernel(%arg0: i32, %arg1: memref<128x128xbf16, #tpu.memory_space<vmem>>, %arg2: memref<128x128xbf16, #tpu.memory_space<vmem>>, %arg3: memref<128x128xf32, #tpu.memory_space<vmem>>, %arg4: memref<1x128xf32, #tpu.memory_space<vmem>>, %arg5: memref<1x128xf32, #tpu.memory_space<vmem>>) attributes {dimension_semantics = [#tpu.dimension_semantics<arbitrary>], iteration_bounds = array<i64: 1>, scalar_prefetch = 0 : i64, scratch_operands = 0 : i64, tpu.core_type = #tpu.core_type<tc>, window_params = [{transform_indices = @transform_0, window_bounds = array<i64: 128, 128>}, {pipeline_mode = #tpu.pipeline_mode<synchronous>, transform_indices = @transform_1, window_bounds = array<i64: 128, 128>}, {transform_indices = @transform_2, window_bounds = array<i64: 128, 128>}, {pipeline_mode = #tpu.pipeline_mode<synchronous>, transform_indices = @transform_3, window_bounds = array<i64: 1, 128>}, {pipeline_mode = #tpu.pipeline_mode<synchronous>, transform_indices = @transform_4, window_bounds = array<i64: 1, 128>}]} {
    %c0_i32 = arith.constant 0 : i32
    %0 = arith.cmpi eq, %arg0, %c0_i32 : i32
    %1 = arith.extui %0 : i1 to i32
    %c0_i32_0 = arith.constant 0 : i32
    %2 = arith.cmpi ne, %1, %c0_i32_0 : i32
    scf.if %2 {
      %cst_16 = arith.constant 0.000000e+00 : f32
      %18 = vector.broadcast %cst_16 : f32 to vector<1x128xf32>
      %c0_17 = arith.constant 0 : index
      %c0_18 = arith.constant 0 : index
      %19 = vector.load %arg4[%c0_17, %c0_18] : memref<1x128xf32, #tpu.memory_space<vmem>>, vector<1x128xf32>
      tpu.vector_store %arg4[%c0_17, %c0_18], %18 {strides = array<i32>} : memref<1x128xf32, #tpu.memory_space<vmem>>, vector<1x128xf32>,
      %cst_19 = arith.constant 0.000000e+00 : f32
      %20 = vector.broadcast %cst_19 : f32 to vector<1x128xf32>
      %c0_20 = arith.constant 0 : index
      %c0_21 = arith.constant 0 : index
      %21 = vector.load %arg5[%c0_20, %c0_21] : memref<1x128xf32, #tpu.memory_space<vmem>>, vector<1x128xf32>
      tpu.vector_store %arg5[%c0_20, %c0_21], %20 {strides = array<i32>} : memref<1x128xf32, #tpu.memory_space<vmem>>, vector<1x128xf32>,
    } else {
    }
    %c0 = arith.constant 0 : index
    %c0_1 = arith.constant 0 : index
    %3 = vector.load %arg1[%c0, %c0_1] : memref<128x128xbf16, #tpu.memory_space<vmem>>, vector<128x128xbf16>
    %c0_2 = arith.constant 0 : index
    %c0_3 = arith.constant 0 : index
    %4 = vector.load %arg2[%c0_2, %c0_3] : memref<128x128xbf16, #tpu.memory_space<vmem>>, vector<128x128xbf16>
    %cst = arith.constant dense<0.000000e+00> : vector<128x128xf32>
    %5 = tpu.matmul %3, %4, %cst {dimension_numbers = #tpu.dot_dimension_numbers<[1], [0], [0], [1], [0, 0, 1, 1], [], []>} : vector<128x128xbf16>, vector<128x128xbf16>, vector<128x128xf32> -> vector<128x128xf32>
    %c0_4 = arith.constant 0 : index
    %c0_5 = arith.constant 0 : index
    %6 = vector.load %arg3[%c0_4, %c0_5] : memref<128x128xf32, #tpu.memory_space<vmem>>, vector<128x128xf32>
    tpu.vector_store %arg3[%c0_4, %c0_5], %5 {strides = array<i32>} : memref<128x128xf32, #tpu.memory_space<vmem>>, vector<128x128xf32>,
    %c0_6 = arith.constant 0 : index
    %c0_7 = arith.constant 0 : index
    %7 = vector.load %arg4[%c0_6, %c0_7] : memref<1x128xf32, #tpu.memory_space<vmem>>, vector<1x128xf32>
    %cst_8 = arith.constant dense<0.000000e+00> : vector<128xf32>
    %8 = vector.multi_reduction <add>, %5, %cst_8 [0] : vector<128x128xf32> to vector<128xf32>
    %9 = vector.shape_cast %8 : vector<128xf32> to vector<1x128xf32>
    %10 = arith.addf %7, %9 : vector<1x128xf32>
    %c0_9 = arith.constant 0 : index
    %c0_10 = arith.constant 0 : index
    %11 = vector.load %arg4[%c0_9, %c0_10] : memref<1x128xf32, #tpu.memory_space<vmem>>, vector<1x128xf32>
    tpu.vector_store %arg4[%c0_9, %c0_10], %10 {strides = array<i32>} : memref<1x128xf32, #tpu.memory_space<vmem>>, vector<1x128xf32>,
    %c0_11 = arith.constant 0 : index
    %c0_12 = arith.constant 0 : index
    %12 = vector.load %arg5[%c0_11, %c0_12] : memref<1x128xf32, #tpu.memory_space<vmem>>, vector<1x128xf32>
    %13 = arith.mulf %5, %5 : vector<128x128xf32>
    %cst_13 = arith.constant dense<0.000000e+00> : vector<128xf32>
    %14 = vector.multi_reduction <add>, %13, %cst_13 [0] : vector<128x128xf32> to vector<128xf32>
    %15 = vector.shape_cast %14 : vector<128xf32> to vector<1x128xf32>
    %16 = arith.addf %12, %15 : vector<1x128xf32>
    %c0_14 = arith.constant 0 : index
    %c0_15 = arith.constant 0 : index
    %17 = vector.load %arg5[%c0_14, %c0_15] : memref<1x128xf32, #tpu.memory_space<vmem>>, vector<1x128xf32>
    tpu.vector_store %arg5[%c0_14, %c0_15], %16 {strides = array<i32>} : memref<1x128xf32, #tpu.memory_space<vmem>>, vector<1x128xf32>,
    return
  }
  func.func @transform_0(%arg0: i32) -> (i32, i32) {
    %c0_i32 = arith.constant 0 : i32
    %c0_i32_0 = arith.constant 0 : i32
    return %arg0, %c0_i32 : i32, i32
  }
  func.func @transform_1(%arg0: i32) -> (i32, i32) {
    %c0_i32 = arith.constant 0 : i32
    %c0_i32_0 = arith.constant 0 : i32
    %c0_i32_1 = arith.constant 0 : i32
    return %c0_i32, %c0_i32_0 : i32, i32
  }
  func.func @transform_2(%arg0: i32) -> (i32, i32) {
    %c0_i32 = arith.constant 0 : i32
    %c0_i32_0 = arith.constant 0 : i32
    return %arg0, %c0_i32 : i32, i32
  }
  func.func @transform_3(%arg0: i32) -> (i32, i32) {
    %c0_i32 = arith.constant 0 : i32
    %c0_i32_0 = arith.constant 0 : i32
    %c0_i32_1 = arith.constant 0 : i32
    return %c0_i32, %c0_i32_0 : i32, i32
  }
  func.func @transform_4(%arg0: i32) -> (i32, i32) {
    %c0_i32 = arith.constant 0 : i32
    %c0_i32_0 = arith.constant 0 : i32
    %c0_i32_1 = arith.constant 0 : i32
    return %c0_i32, %c0_i32_0 : i32, i32
  }
}

</mosaic_0001>

<bundles_post_ra>
// kernel: tpu_custom_call.1
= control target key start
LH: loop header
LB: loop body
LE: loop exit
PB: predicated region body
PF: predicated region fallthrough
CT: control target
= control target key end

     0   :  { %10 = vsyncpa [#allocation3], 0  ;;  %s753_s0 = inlined_call_operand.hbm [shape: bf16[128,128], index: 0, kind: input, shape index: {}]   ;;  %s754_s1 = inlined_call_operand.hbm [shape: bf16[128,128], index: 1, kind: input, shape index: {}]   ;;  %s755_s2 = inlined_call_operand.hbm [shape: f32[128,128], index: 2, kind: output, shape index: {0}]   ;;  %s756_s3 = inlined_call_operand.hbm [shape: f32[1,128], index: 3, kind: output, shape index: {1}]   ;;  %s757_s4 = inlined_call_operand.hbm [shape: f32[1,128], index: 4, kind: output, shape index: {2}]  }
   0x1   :  { %11 = vsyncpa [#allocation6], 0 }
   0x2   :  { %12 = vsyncpa [#allocation4], 0 }
   0x3   :  { %13 = vsyncpa [#allocation9], 0  ;;  %s625_s15 = smov [#allocation2]   ;;  %s507_s19 = scalar_lea.hbm %s753_s0, 1024 }
   0x4   :  { %s19_s16 = sshll.u32 %s625_s15, 4  ;;  %p508_p0 = scmp.ne.s32.totalorder %s753_s0, %s507_s19  ;;  %s20_s16 = int_to_ptr.vmem [resolvable:$true] %s19_s16 }
   0x5   :  { %p511_p1 = scmp.lt.u32.totalorder %s507_s19, %s753_s0 }
   0x7   :  { %p513_p2 = pnand %p511_p1, %p508_p0 }
   0x9   :  { %516 = shalt.err (!%p513_p2)
}
   0xa   :  { %s517_s24 = scalar_lea.vmem %s20_s16, 1024  ;;  %p522_p4 = scmp.lt.s32.totalorder %s20_s16, %s20_s16 }
   0xb   :  { %p518_p3 = scmp.ne.s32.totalorder %s20_s16, %s517_s24  ;;  %p523_p5 = scmp.lt.s32.totalorder %s517_s24, %s517_s24 }
   0xd   :  { %p524_p6 = por %p523_p5, %p522_p4 }
   0xf   :  { %p525_p7 = pnand %p524_p6, %p518_p3 }
  0x11   :  { %528 = shalt.err (!%p525_p7)
}
  0x12   :  { %s626_s25 = smov 64   ;;  %s627_s26 = smov 4  }
  0x13   :  { %25 = dma.hbm_to_vmem [thread:$0]  %s753_s0, 1024, %s20_s16, [#allocation3], %s626_s25, %s626_s25, %s627_s26  }
  0x14   :  { %s628_s29 = smov [#allocation5]   ;;  %s529_s7 = scalar_lea.hbm %s754_s1, 1024 }
  0x15   :  { %s31_s30 = sshll.u32 %s628_s29, 4  ;;  %p530_p8 = scmp.ne.s32.totalorder %s754_s1, %s529_s7  ;;  %s32_s30 = int_to_ptr.vmem [resolvable:$true] %s31_s30 }
  0x16   :  { %p533_p9 = scmp.lt.u32.totalorder %s529_s7, %s754_s1 }
  0x18   :  { %p535_p10 = pnand %p533_p9, %p530_p8 }
  0x1a   :  { %538 = shalt.err (!%p535_p10)
}
  0x1b   :  { %s539_s12 = scalar_lea.vmem %s32_s30, 1024  ;;  %p544_p12 = scmp.lt.s32.totalorder %s32_s30, %s32_s30 }
  0x1c   :  { %p540_p11 = scmp.ne.s32.totalorder %s32_s30, %s539_s12  ;;  %p545_p13 = scmp.lt.s32.totalorder %s539_s12, %s539_s12 }
  0x1e   :  { %p546_p0 = por %p545_p13, %p544_p12 }
  0x20   :  { %p547_p1 = pnand %p546_p0, %p540_p11 }
  0x22   :  { %550 = shalt.err (!%p547_p1)
}
  0x23   :  { %37 = dma.hbm_to_vmem [thread:$0]  %s754_s1, 1024, %s32_s30, [#allocation6], %s626_s25, %s626_s25, %s627_s26  }
  0x24   :  { %617 = dma.done.wait [#allocation3], 1024  }
  0x25   :  { %618 = vsyncadd [#allocation3], 4294966272 }
  0x26   :  { %619 = dma.done.wait [#allocation6], 1024  }
  0x27   :  { %620 = vsyncadd [#allocation6], 4294966272  ;;  %v491_v0 = vld [vmem:[#allocation5] sm:$0xff]   ;;  %v492_v1 = vld [vmem:[#allocation5 + $0x8] sm:$0xff]   ;;  %v629_v16 = vmov 0.0   ;;  %s630_s1 = smov [#allocation7]  }
  0x28   :  { %433 = vmatprep.subr.bf16.mxu0 %v491_v0  ;;  %465 = vmatprep.subr.bf16.mxu1 %v491_v0  ;;  %v493_v2 = vld [vmem:[#allocation5 + $0x10] sm:$0xff]   ;;  %v494_v3 = vld [vmem:[#allocation5 + $0x18] sm:$0xff]   ;;  %v499_v4 = vld [vmem:[#allocation2] sm:$0xff]   ;;  %49 = vst [vmem:[#allocation8] sm:$0x1] %v629_v16  ;;  %s361_s14 = sshll.u32 %s630_s1, 4  ;;  %s693_s14 = int_to_ptr.vmem [resolvable:$true] %s361_s14 }
  0x29   :  { %434 = vmatpush3.bf16.msra.mxu0 %v491_v0  ;;  %473 = vmatpush3.bf16.msra.mxu1 %v491_v0  ;;  %v495_v5 = vld [vmem:[#allocation5 + $0x20] sm:$0xff]   ;;  %v496_v7 = vld [vmem:[#allocation5 + $0x28] sm:$0xff]   ;;  %v497_v8 = vld [vmem:[#allocation5 + $0x30] sm:$0xff]   ;;  %50 = vst [vmem:[#allocation10] sm:$0x1] %v629_v16  ;;  %s551_s15 = scalar_lea.vmem %s693_s14, 2048  ;;  %p556_p3 = scmp.lt.s32.totalorder %s693_s14, %s693_s14 }
  0x2a   :  { %435 = vmatprep.subr.bf16.mxu0 %v492_v1  ;;  %466 = vmatprep.subr.bf16.mxu1 %v492_v1  ;;  %v503_v6 = vld [vmem:[#allocation2 + $0x20] sm:$0xff]   ;;  %v498_v9 = vld [vmem:[#allocation5 + $0x38] sm:$0xff]   ;;  %v500_v10 = vld [vmem:[#allocation2 + $0x8] sm:$0xff]   ;;  %p552_p2 = scmp.ne.s32.totalorder %s693_s14, %s551_s15  ;;  %p557_p4 = scmp.lt.s32.totalorder %s551_s15, %s551_s15 }
  0x2b   :  { %449 = vmatprep.mubr.bf16.mxu0 %v499_v4  ;;  %457 = vmatprep.mubr.bf16.mxu1 %v503_v6  ;;  %v504_v11 = vld [vmem:[#allocation2 + $0x28] sm:$0xff]   ;;  %v501_v12 = vld [vmem:[#allocation2 + $0x10] sm:$0xff]   ;;  %v502_v14 = vld [vmem:[#allocation2 + $0x18] sm:$0xff]  }
  0x2c   :  { %v505_v13 = vld [vmem:[#allocation2 + $0x30] sm:$0xff]   ;;  %v506_v15 = vld [vmem:[#allocation2 + $0x38] sm:$0xff]   ;;  %p558_p5 = por %p557_p4, %p556_p3 }
  0x2d   :  { %436 = vmatpush3.bf16.msra.mxu0 %v492_v1  ;;  %474 = vmatpush3.bf16.msra.mxu1 %v492_v1 }
  0x2e   :  { %437 = vmatprep.subr.bf16.mxu0 %v493_v2  ;;  %467 = vmatprep.subr.bf16.mxu1 %v493_v2  ;;  %p559_p6 = pnand %p558_p5, %p552_p2 }
  0x31   :  { %438 = vmatpush3.bf16.msra.mxu0 %v493_v2  ;;  %475 = vmatpush3.bf16.msra.mxu1 %v493_v2 }
  0x32   :  { %439 = vmatprep.subr.bf16.mxu0 %v494_v3  ;;  %468 = vmatprep.subr.bf16.mxu1 %v494_v3 }
  0x35   :  { %440 = vmatpush3.bf16.msra.mxu0 %v494_v3  ;;  %476 = vmatpush3.bf16.msra.mxu1 %v494_v3 }
  0x36   :  { %441 = vmatprep.subr.bf16.mxu0 %v495_v5  ;;  %469 = vmatprep.subr.bf16.mxu1 %v495_v5 }
  0x39   :  { %442 = vmatpush3.bf16.msra.mxu0 %v495_v5  ;;  %477 = vmatpush3.bf16.msra.mxu1 %v495_v5 }
  0x3a   :  { %443 = vmatprep.subr.bf16.mxu0 %v496_v7  ;;  %470 = vmatprep.subr.bf16.mxu1 %v496_v7 }
  0x3d   :  { %444 = vmatpush3.bf16.msra.mxu0 %v496_v7  ;;  %478 = vmatpush3.bf16.msra.mxu1 %v496_v7 }
  0x3e   :  { %445 = vmatprep.subr.bf16.mxu0 %v497_v8  ;;  %471 = vmatprep.subr.bf16.mxu1 %v497_v8 }
  0x41   :  { %446 = vmatpush3.bf16.msra.mxu0 %v497_v8  ;;  %479 = vmatpush3.bf16.msra.mxu1 %v497_v8 }
  0x42   :  { %447 = vmatprep.subr.bf16.mxu0 %v498_v9  ;;  %472 = vmatprep.subr.bf16.mxu1 %v498_v9 }
  0x45   :  { %448 = vmatpush3.bf16.msra.mxu0 %v498_v9  ;;  %480 = vmatpush3.bf16.msra.mxu1 %v498_v9 }
  0x48   :  { %450 = vmatmul.mubr.bf16.vlgmr.msra.gmra.mrb[0].mxu0 %v500_v10  ;;  %458 = vmatmul.mubr.bf16.vlgmr.msra.gmra.mrb[0].mxu1 %v504_v11 }
  0x49   :  { %453 = vmatprep.mubr.bf16.mxu0 %v501_v12  ;;  %461 = vmatprep.mubr.bf16.mxu1 %v505_v13 }
  0x50   :  { %454 = vmatmul.mubr.bf16.gmra.mrb[4].mxu0 %v502_v14  ;;  %462 = vmatmul.mubr.bf16.gmra.mrb[4].mxu1 %v506_v15 }
 0x11b   :  { %v451_v17 = vpop.f32.mrb[0].mxu0  ;;  %v684_v18 = vpop.f32.mrb[0].mxu1 }
 0x11c   :  { %278 = vst [vmem:[#allocation7 + $0x10] sm:$0xff] %v451_v17  ;;  %v213_v19 = vpop.f32.mrb[1].mxu0  ;;  %286 = vst [vmem:[#allocation7 + $0x50] sm:$0xff] %v684_v18  ;;  %v687_v20 = vpop.f32.mrb[1].mxu1  ;;  %v319_v28 = vmul.f32 %v451_v17, %v451_v17 }
 0x11d   :  { %276 = vst [vmem:[#allocation7] sm:$0xff] %v213_v19  ;;  %v452_v21 = vpop.f32.mrb[2].mxu0  ;;  %284 = vst [vmem:[#allocation7 + $0x40] sm:$0xff] %v687_v20  ;;  %v690_v22 = vpop.f32.mrb[2].mxu1  ;;  %v317_v25 = vmul.f32 %v213_v19, %v213_v19 }
 0x11e   :  { %279 = vst [vmem:[#allocation7 + $0x18] sm:$0xff] %v452_v21  ;;  %v216_v23 = vpop.f32.mrb[3].mxu0  ;;  %287 = vst [vmem:[#allocation7 + $0x58] sm:$0xff] %v690_v22  ;;  %v248_v24 = vpop.f32.mrb[3].mxu1  ;;  %v320_v31 = vmul.f32 %v452_v21, %v452_v21 }
 0x11f   :  { %277 = vst [vmem:[#allocation7 + $0x8] sm:$0xff] %v216_v23  ;;  %v293_v26 = vadd.f32 %v216_v23, %v213_v19  ;;  %v318_v27 = vmul.f32 %v216_v23, %v216_v23  ;;  %285 = vst [vmem:[#allocation7 + $0x48] sm:$0xff] %v248_v24 }
 0x121   :  { %v294_v29 = vadd.f32 %v451_v17, %v293_v26  ;;  %v333_v30 = vadd.f32 %v318_v27, %v317_v25 }
 0x123   :  { %v334_v32 = vadd.f32 %v333_v30, %v319_v28  ;;  %v455_v33 = vpop.f32.mrb[4].mxu0  ;;  %v295_v34 = vadd.f32 %v452_v21, %v294_v29  ;;  %v463_v35 = vpop.f32.mrb[4].mxu1 }
 0x124   :  { %282 = vst [vmem:[#allocation7 + $0x30] sm:$0xff] %v455_v33  ;;  %v229_v36 = vpop.f32.mrb[5].mxu0  ;;  %290 = vst [vmem:[#allocation7 + $0x70] sm:$0xff] %v463_v35  ;;  %v261_v37 = vpop.f32.mrb[5].mxu1 }
 0x125   :  { %280 = vst [vmem:[#allocation7 + $0x20] sm:$0xff] %v229_v36  ;;  %v296_v38 = vadd.f32 %v295_v34, %v229_v36  ;;  %v321_v39 = vmul.f32 %v229_v36, %v229_v36  ;;  %v335_v40 = vadd.f32 %v334_v32, %v320_v31  ;;  %v456_v41 = vpop.f32.mrb[6].mxu0  ;;  %288 = vst [vmem:[#allocation7 + $0x60] sm:$0xff] %v261_v37  ;;  %v464_v42 = vpop.f32.mrb[6].mxu1 }
 0x126   :  { %283 = vst [vmem:[#allocation7 + $0x38] sm:$0xff] %v456_v41  ;;  %v232_v43 = vpop.f32.mrb[7].mxu0  ;;  %291 = vst [vmem:[#allocation7 + $0x78] sm:$0xff] %v464_v42  ;;  %v264_v44 = vpop.f32.mrb[7].mxu1 }
 0x127   :  { %v336_v45 = vadd.f32 %v335_v40, %v321_v39  ;;  %281 = vst [vmem:[#allocation7 + $0x28] sm:$0xff] %v232_v43  ;;  %v297_v46 = vadd.f32 %v296_v38, %v232_v43  ;;  %v322_v47 = vmul.f32 %v232_v43, %v232_v43  ;;  %289 = vst [vmem:[#allocation7 + $0x68] sm:$0xff] %v264_v44 }
 0x128   :  { %562 = shalt.err (!%p559_p6)
}
 0x129   :  { %s563_s18 = scalar_lea.hbm %s755_s2, 2048 }
 0x12a   :  { %p564_p7 = scmp.ne.s32.totalorder %s755_s2, %s563_s18  ;;  %p567_p8 = scmp.lt.u32.totalorder %s563_s18, %s755_s2 }
 0x12c   :  { %p569_p9 = pnand %p567_p8, %p564_p7 }
 0x12e   :  { %572 = shalt.err (!%p569_p9)
}
 0x12f   :  { %s631_s23 = smov 128   ;;  %s632_s24 = smov 8   ;;  %v323_v48 = vmul.f32 %v455_v33, %v455_v33  ;;  %v298_v49 = vadd.f32 %v455_v33, %v297_v46  ;;  %v337_v50 = vadd.f32 %v336_v45, %v322_v47  ;;  %v324_v51 = vmul.f32 %v456_v41, %v456_v41  ;;  %v316_v27 = vld [vmem:[#allocation10] sm:$0x1] }
 0x130   :  { %367 = dma.vmem_to_hbm [thread:$0]  %s693_s14, 2048, %s755_s2, [#allocation4], %s631_s23, %s631_s23, %s632_s24   ;;  %v325_v54 = vmul.f32 %v687_v20, %v687_v20  ;;  %v326_v59 = vmul.f32 %v248_v24, %v248_v24  ;;  %v327_v60 = vmul.f32 %v684_v18, %v684_v18  ;;  %v328_v63 = vmul.f32 %v690_v22, %v690_v22 }
 0x131   :  { %v338_v52 = vadd.f32 %v337_v50, %v323_v48  ;;  %v299_v53 = vadd.f32 %v456_v41, %v298_v49  ;;  %v329_v2 = vmul.f32 %v261_v37, %v261_v37  ;;  %v330_v7 = vmul.f32 %v264_v44, %v264_v44  ;;  %s633_s2 = smov [#allocation8]   ;;  %s634_s28 = smov [#allocation10]  }
 0x132   :  { %v331_v8 = vmul.f32 %v463_v35, %v463_v35  ;;  %v332_v11 = vmul.f32 %v464_v42, %v464_v42  ;;  %s374_s27 = sshll.u32 %s633_s2, 4  ;;  %s384_s29 = sshll.u32 %s634_s28, 4  ;;  %s375_s27 = int_to_ptr.vmem [resolvable:$true] %s374_s27  ;;  %s721_s29 = int_to_ptr.vmem [resolvable:$true] %s384_s29 }
 0x133   :  { %v300_v55 = vadd.f32 %v299_v53, %v687_v20  ;;  %v339_v56 = vadd.f32 %v338_v52, %v324_v51  ;;  %s573_s30 = scalar_lea.vmem %s375_s27, 16  ;;  %s577_s5 = scalar_lea.vmem %s375_s27, 32 }
 0x134   :  { %p574_p10 = scmp.ne.s32.totalorder %s375_s27, %s573_s30  ;;  %p578_p11 = scmp.lt.s32.totalorder %s375_s27, %s375_s27 }
 0x135   :  { %v340_v57 = vadd.f32 %v339_v56, %v325_v54  ;;  %v301_v58 = vadd.f32 %v300_v55, %v248_v24  ;;  %v292_v24 = vld [vmem:[#allocation8] sm:$0x1]  ;;  %p579_p12 = scmp.lt.s32.totalorder %s577_s5, %s573_s30 }
 0x137   :  { %v302_v61 = vadd.f32 %v684_v18, %v301_v58  ;;  %v341_v62 = vadd.f32 %v340_v57, %v326_v59  ;;  %p580_p13 = por %p579_p12, %p578_p11 }
 0x139   :  { %v342_v0 = vadd.f32 %v341_v62, %v327_v60  ;;  %v303_v1 = vadd.f32 %v690_v22, %v302_v61  ;;  %p581_p0 = pnand %p580_p13, %p574_p10 }
 0x13b   :  { %v304_v3 = vadd.f32 %v303_v1, %v261_v37  ;;  %v343_v4 = vadd.f32 %v342_v0, %v328_v63 }
 0x13d   :  { %v344_v5 = vadd.f32 %v343_v4, %v329_v2  ;;  %v305_v6 = vadd.f32 %v304_v3, %v264_v44 }
 0x13f   :  { %v306_v9 = vadd.f32 %v463_v35, %v305_v6  ;;  %v345_v10 = vadd.f32 %v344_v5, %v330_v7 }
 0x141   :  { %v307_v12 = vadd.f32 %v464_v42, %v306_v9  ;;  %v346_v13 = vadd.f32 %v345_v10, %v331_v8 }
 0x143   :  { %v308_v14 = vrot.slane %v307_v12, 4  ;;  %v347_v15 = vadd.f32 %v346_v13, %v332_v11 }
 0x145   :  { %v309_v16 = vadd.f32 %v308_v14, %v307_v12  ;;  %v348_v17 = vrot.slane %v347_v15, 4 }
 0x147   :  { %v310_v18 = vrot.slane %v309_v16, 2  ;;  %v349_v19 = vadd.f32 %v348_v17, %v347_v15 }
 0x149   :  { %v311_v20 = vadd.f32 %v310_v18, %v309_v16  ;;  %v350_v21 = vrot.slane %v349_v19, 2 }
 0x14b   :  { %v351_v22 = vadd.f32 %v350_v21, %v349_v19  ;;  %v312_v23 = vrot.slane %v311_v20, 1 }
 0x14d   :  { %v313_v25 = vadd.f32 %v312_v23, %v311_v20  ;;  %v352_v26 = vrot.slane %v351_v22, 1 }
 0x14f   :  { %v314_v28 = vadd.f32 %v313_v25, %v292_v24  ;;  %v353_v29 = vadd.f32 %v352_v26, %v351_v22 }
 0x151   :  { %315 = vst [vmem:[#allocation8] sm:$0x1] %v314_v28  ;;  %v354_v30 = vadd.f32 %v353_v29, %v316_v27 }
 0x152   :  { %584 = shalt.err (!%p581_p0)
}
 0x153   :  { %s585_s8 = scalar_lea.hbm %s756_s3, 16 }
 0x154   :  { %p586_p1 = scmp.ne.s32.totalorder %s756_s3, %s585_s8  ;;  %p589_p2 = scmp.lt.u32.totalorder %s585_s8, %s756_s3 }
 0x156   :  { %p591_p3 = pnand %p589_p2, %p586_p1 }
 0x158   :  { %594 = shalt.err (!%p591_p3)
}
 0x159   :  { %377 = dma.vmem_to_hbm [thread:$0]  %s375_s27, 16, %s756_s3, [#allocation9]   ;;  %355 = vst [vmem:[#allocation10] sm:$0x1] %v354_v30 }
 0x15a   :  { %s595_s1 = scalar_lea.vmem %s721_s29, 16  ;;  %s599_s14 = scalar_lea.vmem %s721_s29, 32 }
 0x15b   :  { %p596_p4 = scmp.ne.s32.totalorder %s721_s29, %s595_s1  ;;  %p600_p5 = scmp.lt.s32.totalorder %s721_s29, %s721_s29 }
 0x15c   :  { %p601_p6 = scmp.lt.s32.totalorder %s599_s14, %s595_s1 }
 0x15e   :  { %p602_p7 = por %p601_p6, %p600_p5 }
 0x160   :  { %p603_p8 = pnand %p602_p7, %p596_p4 }
 0x162   :  { %606 = shalt.err (!%p603_p8)
}
 0x163   :  { %s607_s17 = scalar_lea.hbm %s757_s4, 16 }
 0x164   :  { %p608_p9 = scmp.ne.s32.totalorder %s757_s4, %s607_s17  ;;  %p611_p10 = scmp.lt.u32.totalorder %s607_s17, %s757_s4 }
 0x166   :  { %p613_p11 = pnand %p611_p10, %p608_p9 }
 0x168   :  { %616 = shalt.err (!%p613_p11)
}
 0x169   :  { %387 = dma.vmem_to_hbm [thread:$0]  %s721_s29, 16, %s757_s4, [#allocation9]  }
 0x16a   :  { %621 = dma.done.wait [#allocation4], 2048  }
 0x16b   :  { %622 = vsyncadd [#allocation4], 4294965248 }
 0x16c   :  { %623 = dma.done.wait [#allocation9], 32  }
 0x16d   :  { %624 = vsyncadd [#allocation9], 4294967264 }
 0x16e   :  { %397 = vsyncpa [#allocation3], 1 }
 0x16f   :  { %398 = vsyncpa [#allocation6], 1 }
 0x170   :  { %399 = vsyncpa [#allocation4], 1 }
 0x171   :  { %400 = vsyncpa [#allocation9], 1 }

</bundles_post_ra>
